<compile_context>
chip_gen: v6e
topology: v6e:2x2x1
jax: 0.10.0
libtpu: 0.0.40
codegen_flags: <defaults>
</compile_context>

<pallas_src>
import math
import functools

import jax
import jax.numpy as jnp
from jax.experimental import pallas as pl
from jax.experimental.pallas import tpu as pltpu


def _qkv_proj_kernel(q_ref, k_ref, v_ref,
                     wq_ref, bq_ref, wk_ref, bk_ref, wv_ref, bv_ref,
                     qp_ref, kp_ref, vp_ref):
    # Blocks: activations (1, tp, D); weights (D, D) in (in, out) layout;
    # biases (1, D).  The attention scale is already folded into wq/bq.
    q = q_ref[0]
    k = k_ref[0]
    v = v_ref[0]
    qp_ref[0] = (jnp.dot(q, wq_ref[...], preferred_element_type=jnp.float32)
                 + bq_ref[...]).astype(qp_ref.dtype)
    kp_ref[0] = (jnp.dot(k, wk_ref[...], preferred_element_type=jnp.float32)
                 + bk_ref[...]).astype(kp_ref.dtype)
    vp_ref[0] = (jnp.dot(v, wv_ref[...], preferred_element_type=jnp.float32)
                 + bv_ref[...]).astype(vp_ref.dtype)


def _flash_attn_kernel(qp_ref, kp_ref, vp_ref, mask_ref, wo_ref, bo_ref,
                       o_ref, m_sc, l_sc, acc_sc, *, num_heads, d_k):
    ki = pl.program_id(2)

    @pl.when(ki == 0)
    def _init():
        m_sc[...] = jnp.full_like(m_sc, -jnp.inf)
        l_sc[...] = jnp.zeros_like(l_sc)
        acc_sc[...] = jnp.zeros_like(acc_sc)

    qp = qp_ref[0]                 # (tq, D)  (1/sqrt(d_k) already folded in)
    kp = kp_ref[0]                 # (tk, D)
    vp = vp_ref[0]                 # (tk, D)
    tq = qp.shape[0]
    tk = kp.shape[0]

    # Hoisted mask broadcast: True == masked out.  Done ONCE per KV step, not
    # once per head (JAX does not CSE broadcast_in_dim).
    masked = jnp.broadcast_to(mask_ref[0] != 0, (tq, tk))

    # Heads live in contiguous lane windows of the (tile, D) projections, so
    # no (1,0,2) transposes are needed.  num_heads is small -> unrolled loop.
    for h in range(num_heads):
        sl = slice(h * d_k, (h + 1) * d_k)
        q_h = qp[:, sl]            # (tq, d_k)
        k_h = kp[:, sl]            # (tk, d_k)
        v_h = vp[:, sl]            # (tk, d_k)

        # scores (tq, tk): contract over d_k ("NT" matmul, no data transpose).
        s = jax.lax.dot_general(q_h, k_h, (((1,), (1,)), ((), ())),
                                preferred_element_type=jnp.float32)
        s = jnp.where(masked, -1.0e9, s)   # matches torch masked_fill(mask==0)

        m_prev = m_sc[h]                               # (tq, 1)
        l_prev = l_sc[h]                               # (tq, 1)
        m_new = jnp.maximum(m_prev, jnp.max(s, axis=-1, keepdims=True))
        alpha = jnp.exp(m_prev - m_new)                # (tq, 1)
        p = jnp.exp(s - m_new)                         # (tq, tk) f32
        l_sc[h] = alpha * l_prev + jnp.sum(p, axis=-1, keepdims=True)
        m_sc[h] = m_new

        pv = jnp.dot(p.astype(v_h.dtype), v_h,
                     preferred_element_type=jnp.float32)   # (tq, d_k)
        acc_sc[h] = alpha * acc_sc[h] + pv

    @pl.when(ki == pl.num_programs(2) - 1)
    def _finalize():
        # Per-head softmax normalization (reciprocal on the EUP slot), then a
        # SINGLE full-width output projection:
        #   out = concat_h(ctx_h) @ Wo^T + bo
        # concat_h(ctx_h) is exactly context.transpose(1,2).reshape(S, H*dk),
        # since heads are contiguous lane windows -- no data transpose needed,
        # and the matmul contracts over the full D (good MXU utilization even
        # when d_k < 128).
        ctx = jnp.concatenate(
            [acc_sc[h] * pl.reciprocal(l_sc[h], approx=True)
             for h in range(num_heads)], axis=-1)          # (tq, D) f32
        out = jnp.dot(ctx.astype(wo_ref.dtype), wo_ref[...],
                      preferred_element_type=jnp.float32) + bo_ref[...]
        o_ref[0] = out.astype(o_ref.dtype)


def multi_head_attention(q, k, v, params, num_heads, mask=None, *,
                         block_q=256, block_k=256, block_proj=256,
                         vmem_limit_bytes=None):
    """Forward pass of MultiHeadAttention (eval mode: dropout == identity).

    q, k, v : (B, S, D) arrays.
    mask    : optional (B, S); 0 means "masked out" (torch masked_fill(mask==0)).
    params  : PyTorch-layout Linear params: 'w*' are (out, in), 'b*' are (out,).
    """
    assert q.shape == k.shape == v.shape
    B, S, D = q.shape
    assert D % num_heads == 0
    d_k = D // num_heads

    tq = min(block_q, S)
    tk = min(block_k, S)
    tp = min(block_proj, S)
    assert S % tq == 0 and S % tk == 0 and S % tp == 0, \
        "sequence length must be divisible by the chosen block sizes"

    # Fold the 1/sqrt(d_k) scale into W_q / b_q; pre-transpose (out,in)->(in,out)
    # once, outside the kernels (store weights pre-transposed in a real model).
    scale = 1.0 / math.sqrt(d_k)
    wq = params['wq'].T * scale
    bq = (params['bq'] * scale).reshape(1, D)
    wk = params['wk'].T
    bk = params['bk'].reshape(1, D)
    wv = params['wv'].T
    bv = params['bv'].reshape(1, D)
    wo = params['wo'].T                       # (D, D) = Wo^T, heads contiguous
    bo = params['bo'].reshape(1, D)

    # int32 "masked out" indicator (1 == masked): robust, exact torch semantics.
    if mask is None:
        masked = jnp.zeros((B, 1, S), dtype=jnp.int32)
    else:
        masked = (mask.reshape(B, 1, S) == 0).astype(jnp.int32)
    # TODO(synk): 3-D (B, Sq, Sk) masks (also accepted by the torch module)
    # would just need a (1, tq, tk) mask BlockSpec indexed by (b, qi, ki).

    # ---------------- pass 1: Q/K/V projections -------------------------
    row_spec = pl.BlockSpec((1, tp, D), lambda b, si: (b, si, 0))
    w_spec = pl.BlockSpec((D, D), lambda b, si: (0, 0))
    b_spec = pl.BlockSpec((1, D), lambda b, si: (0, 0))
    proj_shape = jax.ShapeDtypeStruct((B, S, D), q.dtype)

    qp, kp, vp = pl.pallas_call(
        _qkv_proj_kernel,
        out_shape=(proj_shape, proj_shape, proj_shape),
        grid_spec=pltpu.PrefetchScalarGridSpec(
            num_scalar_prefetch=0,
            grid=(B, S // tp),
            in_specs=[row_spec, row_spec, row_spec,
                      w_spec, b_spec, w_spec, b_spec, w_spec, b_spec],
            out_specs=(row_spec, row_spec, row_spec)),
        compiler_params=pltpu.CompilerParams(
            dimension_semantics=("parallel", "parallel"),
            vmem_limit_bytes=vmem_limit_bytes),
    )(q, k, v, wq, bq, wk, bk, wv, bv)

    # --------- pass 2: flash attention + output projection --------------
    q_spec = pl.BlockSpec((1, tq, D), lambda b, qi, ki: (b, qi, 0))
    kv_spec = pl.BlockSpec((1, tk, D), lambda b, qi, ki: (b, ki, 0))
    mask_spec = pl.BlockSpec((1, 1, tk), lambda b, qi, ki: (b, 0, ki))
    wo_spec = pl.BlockSpec((D, D), lambda b, qi, ki: (0, 0))
    bo_spec = pl.BlockSpec((1, D), lambda b, qi, ki: (0, 0))
    out_spec = pl.BlockSpec((1, tq, D), lambda b, qi, ki: (b, qi, 0))

    kernel = functools.partial(_flash_attn_kernel,
                               num_heads=num_heads, d_k=d_k)

    return pl.pallas_call(
        kernel,
        out_shape=jax.ShapeDtypeStruct((B, S, D), q.dtype),
        grid_spec=pltpu.PrefetchScalarGridSpec(
            num_scalar_prefetch=0,
            grid=(B, S // tq, S // tk),
            in_specs=[q_spec, kv_spec, kv_spec, mask_spec, wo_spec, bo_spec],
            out_specs=out_spec,
            scratch_shapes=[
                pltpu.VMEM((num_heads, tq, 1), jnp.float32),    # running max
                pltpu.VMEM((num_heads, tq, 1), jnp.float32),    # running denom
                pltpu.VMEM((num_heads, tq, d_k), jnp.float32),  # running context
            ]),
        compiler_params=pltpu.CompilerParams(
            dimension_semantics=("parallel", "parallel", "arbitrary"),
            vmem_limit_bytes=vmem_limit_bytes),
    )(qp, kp, vp, masked, wo, bo)


def _reference(q, k, v, params, num_heads, mask=None):
    B, S, D = q.shape
    d_k = D // num_heads
    qp = q @ params['wq'].T + params['bq']
    kp = k @ params['wk'].T + params['bk']
    vp = v @ params['wv'].T + params['bv']
    qh = qp.reshape(B, S, num_heads, d_k).transpose(0, 2, 1, 3)
    kh = kp.reshape(B, S, num_heads, d_k).transpose(0, 2, 1, 3)
    vh = vp.reshape(B, S, num_heads, d_k).transpose(0, 2, 1, 3)
    scores = jnp.einsum('bhqd,bhkd->bhqk', qh, kh) / math.sqrt(d_k)
    if mask is not None:
        m = mask.reshape(B, 1, 1, S)
        scores = jnp.where(m == 0, -1.0e9, scores)
    attn = jax.nn.softmax(scores, axis=-1)
    ctx = jnp.einsum('bhqk,bhkd->bhqd', attn, vh)
    ctx = ctx.transpose(0, 2, 1, 3).reshape(B, S, D)
    return ctx @ params['wo'].T + params['bo']


if __name__ == "__main__":
    B, S, D, H = 2, 8, 32, 4
    key = jax.random.PRNGKey(0)
    ks = jax.random.split(key, 12)

    # Deterministic synthetic parameters (PyTorch Linear layout: weight (out, in)).
    bound = 1.0 / math.sqrt(D)
    params = {
        'wq': jax.random.uniform(ks[0], (D, D), jnp.float32, -bound, bound),
        'bq': jax.random.uniform(ks[1], (D,), jnp.float32, -bound, bound),
        'wk': jax.random.uniform(ks[2], (D, D), jnp.float32, -bound, bound),
        'bk': jax.random.uniform(ks[3], (D,), jnp.float32, -bound, bound),
        'wv': jax.random.uniform(ks[4], (D, D), jnp.float32, -bound, bound),
        'bv': jax.random.uniform(ks[5], (D,), jnp.float32, -bound, bound),
        'wo': jax.random.uniform(ks[6], (D, D), jnp.float32, -bound, bound),
        'bo': jax.random.uniform(ks[7], (D,), jnp.float32, -bound, bound),
    }

    q = jax.random.normal(ks[8], (B, S, D), jnp.float32)
    k = jax.random.normal(ks[9], (B, S, D), jnp.float32)
    v = jax.random.normal(ks[10], (B, S, D), jnp.float32)
    mask = (jax.random.uniform(ks[11], (B, S)) > 0.2).astype(jnp.float32)

    out = multi_head_attention(q, k, v, params, H, mask=mask)
    out = jax.block_until_ready(out)

    ref = _reference(q, k, v, params, H, mask=mask)
    assert out.shape == (B, S, D)
    # 1e-3 tolerance: pl.reciprocal(approx=True) (~2^-12 relative) in the
    # softmax normalization, otherwise f32 throughout.
    assert jnp.allclose(out, ref, atol=1e-3, rtol=1e-3), \
        f"max err {jnp.max(jnp.abs(out - ref))}"

    print("KERNEL_OK")
</pallas_src>

<mosaic_0001>
module attributes {stable_mosaic.version = 11 : i64} {
  func.func @_qkv_proj_kernel(%arg0: i32, %arg1: i32, %arg2: memref<1x8x32xf32, #tpu.memory_space<vmem>>, %arg3: memref<1x8x32xf32, #tpu.memory_space<vmem>>, %arg4: memref<1x8x32xf32, #tpu.memory_space<vmem>>, %arg5: memref<32x32xf32, #tpu.memory_space<vmem>>, %arg6: memref<1x32xf32, #tpu.memory_space<vmem>>, %arg7: memref<32x32xf32, #tpu.memory_space<vmem>>, %arg8: memref<1x32xf32, #tpu.memory_space<vmem>>, %arg9: memref<32x32xf32, #tpu.memory_space<vmem>>, %arg10: memref<1x32xf32, #tpu.memory_space<vmem>>, %arg11: memref<1x8x32xf32, #tpu.memory_space<vmem>>, %arg12: memref<1x8x32xf32, #tpu.memory_space<vmem>>, %arg13: memref<1x8x32xf32, #tpu.memory_space<vmem>>) attributes {dimension_semantics = [#tpu.dimension_semantics<parallel>, #tpu.dimension_semantics<parallel>], iteration_bounds = array<i64: 2, 1>, scalar_prefetch = 0 : i64, scratch_operands = 0 : i64, tpu.core_type = #tpu.core_type<tc>, window_params = [{transform_indices = @transform_0, window_bounds = array<i64: 1, 8, 32>}, {transform_indices = @transform_1, window_bounds = array<i64: 1, 8, 32>}, {transform_indices = @transform_2, window_bounds = array<i64: 1, 8, 32>}, {pipeline_mode = #tpu.pipeline_mode<synchronous>, transform_indices = @transform_3, window_bounds = array<i64: 32, 32>}, {pipeline_mode = #tpu.pipeline_mode<synchronous>, transform_indices = @transform_4, window_bounds = array<i64: 1, 32>}, {pipeline_mode = #tpu.pipeline_mode<synchronous>, transform_indices = @transform_5, window_bounds = array<i64: 32, 32>}, {pipeline_mode = #tpu.pipeline_mode<synchronous>, transform_indices = @transform_6, window_bounds = array<i64: 1, 32>}, {pipeline_mode = #tpu.pipeline_mode<synchronous>, transform_indices = @transform_7, window_bounds = array<i64: 32, 32>}, {pipeline_mode = #tpu.pipeline_mode<synchronous>, transform_indices = @transform_8, window_bounds = array<i64: 1, 32>}, {transform_indices = @transform_9, window_bounds = array<i64: 1, 8, 32>}, {transform_indices = @transform_10, window_bounds = array<i64: 1, 8, 32>}, {transform_indices = @transform_11, window_bounds = array<i64: 1, 8, 32>}]} {
    %c0 = arith.constant 0 : index
    %c0_0 = arith.constant 0 : index
    %c0_1 = arith.constant 0 : index
    %0 = vector.load %arg2[%c0, %c0_0, %c0_1] : memref<1x8x32xf32, #tpu.memory_space<vmem>>, vector<1x8x32xf32>
    %1 = vector.shape_cast %0 : vector<1x8x32xf32> to vector<8x32xf32>
    %c0_2 = arith.constant 0 : index
    %c0_3 = arith.constant 0 : index
    %c0_4 = arith.constant 0 : index
    %2 = vector.load %arg3[%c0_2, %c0_3, %c0_4] : memref<1x8x32xf32, #tpu.memory_space<vmem>>, vector<1x8x32xf32>
    %3 = vector.shape_cast %2 : vector<1x8x32xf32> to vector<8x32xf32>
    %c0_5 = arith.constant 0 : index
    %c0_6 = arith.constant 0 : index
    %c0_7 = arith.constant 0 : index
    %4 = vector.load %arg4[%c0_5, %c0_6, %c0_7] : memref<1x8x32xf32, #tpu.memory_space<vmem>>, vector<1x8x32xf32>
    %5 = vector.shape_cast %4 : vector<1x8x32xf32> to vector<8x32xf32>
    %c0_8 = arith.constant 0 : index
    %c0_9 = arith.constant 0 : index
    %6 = vector.load %arg5[%c0_8, %c0_9] : memref<32x32xf32, #tpu.memory_space<vmem>>, vector<32x32xf32>
    %cst = arith.constant dense<0.000000e+00> : vector<8x32xf32>
    %7 = tpu.matmul %1, %6, %cst {dimension_numbers = #tpu.dot_dimension_numbers<[1], [0], [0], [1], [0, 0, 1, 1], [], []>} : vector<8x32xf32>, vector<32x32xf32>, vector<8x32xf32> -> vector<8x32xf32>
    %c0_10 = arith.constant 0 : index
    %c0_11 = arith.constant 0 : index
    %8 = vector.load %arg6[%c0_10, %c0_11] : memref<1x32xf32, #tpu.memory_space<vmem>>, vector<1x32xf32>
    %9 = vector.broadcast %8 : vector<1x32xf32> to vector<8x32xf32>
    %10 = arith.addf %7, %9 : vector<8x32xf32>
    %c0_12 = arith.constant 0 : index
    %c0_13 = arith.constant 0 : index
    %c0_14 = arith.constant 0 : index
    %11 = vector.load %arg11[%c0_12, %c0_13, %c0_14] : memref<1x8x32xf32, #tpu.memory_space<vmem>>, vector<1x8x32xf32>
    %12 = vector.shape_cast %11 : vector<1x8x32xf32> to vector<8x32xf32>
    %13 = vector.shape_cast %10 : vector<8x32xf32> to vector<1x8x32xf32>
    tpu.vector_store %arg11[%c0_12, %c0_13, %c0_14], %13 {strides = array<i32>} : memref<1x8x32xf32, #tpu.memory_space<vmem>>, vector<1x8x32xf32>,
    %c0_15 = arith.constant 0 : index
    %c0_16 = arith.constant 0 : index
    %14 = vector.load %arg7[%c0_15, %c0_16] : memref<32x32xf32, #tpu.memory_space<vmem>>, vector<32x32xf32>
    %cst_17 = arith.constant dense<0.000000e+00> : vector<8x32xf32>
    %15 = tpu.matmul %3, %14, %cst_17 {dimension_numbers = #tpu.dot_dimension_numbers<[1], [0], [0], [1], [0, 0, 1, 1], [], []>} : vector<8x32xf32>, vector<32x32xf32>, vector<8x32xf32> -> vector<8x32xf32>
    %c0_18 = arith.constant 0 : index
    %c0_19 = arith.constant 0 : index
    %16 = vector.load %arg8[%c0_18, %c0_19] : memref<1x32xf32, #tpu.memory_space<vmem>>, vector<1x32xf32>
    %17 = vector.broadcast %16 : vector<1x32xf32> to vector<8x32xf32>
    %18 = arith.addf %15, %17 : vector<8x32xf32>
    %c0_20 = arith.constant 0 : index
    %c0_21 = arith.constant 0 : index
    %c0_22 = arith.constant 0 : index
    %19 = vector.load %arg12[%c0_20, %c0_21, %c0_22] : memref<1x8x32xf32, #tpu.memory_space<vmem>>, vector<1x8x32xf32>
    %20 = vector.shape_cast %19 : vector<1x8x32xf32> to vector<8x32xf32>
    %21 = vector.shape_cast %18 : vector<8x32xf32> to vector<1x8x32xf32>
    tpu.vector_store %arg12[%c0_20, %c0_21, %c0_22], %21 {strides = array<i32>} : memref<1x8x32xf32, #tpu.memory_space<vmem>>, vector<1x8x32xf32>,
    %c0_23 = arith.constant 0 : index
    %c0_24 = arith.constant 0 : index
    %22 = vector.load %arg9[%c0_23, %c0_24] : memref<32x32xf32, #tpu.memory_space<vmem>>, vector<32x32xf32>
    %cst_25 = arith.constant dense<0.000000e+00> : vector<8x32xf32>
    %23 = tpu.matmul %5, %22, %cst_25 {dimension_numbers = #tpu.dot_dimension_numbers<[1], [0], [0], [1], [0, 0, 1, 1], [], []>} : vector<8x32xf32>, vector<32x32xf32>, vector<8x32xf32> -> vector<8x32xf32>
    %c0_26 = arith.constant 0 : index
    %c0_27 = arith.constant 0 : index
    %24 = vector.load %arg10[%c0_26, %c0_27] : memref<1x32xf32, #tpu.memory_space<vmem>>, vector<1x32xf32>
    %25 = vector.broadcast %24 : vector<1x32xf32> to vector<8x32xf32>
    %26 = arith.addf %23, %25 : vector<8x32xf32>
    %c0_28 = arith.constant 0 : index
    %c0_29 = arith.constant 0 : index
    %c0_30 = arith.constant 0 : index
    %27 = vector.load %arg13[%c0_28, %c0_29, %c0_30] : memref<1x8x32xf32, #tpu.memory_space<vmem>>, vector<1x8x32xf32>
    %28 = vector.shape_cast %27 : vector<1x8x32xf32> to vector<8x32xf32>
    %29 = vector.shape_cast %26 : vector<8x32xf32> to vector<1x8x32xf32>
    tpu.vector_store %arg13[%c0_28, %c0_29, %c0_30], %29 {strides = array<i32>} : memref<1x8x32xf32, #tpu.memory_space<vmem>>, vector<1x8x32xf32>,
    return
  }
  func.func @transform_0(%arg0: i32, %arg1: i32) -> (i32, i32, i32) {
    %c0_i32 = arith.constant 0 : i32
    %c0_i32_0 = arith.constant 0 : i32
    return %arg0, %arg1, %c0_i32 : i32, i32, i32
  }
  func.func @transform_1(%arg0: i32, %arg1: i32) -> (i32, i32, i32) {
    %c0_i32 = arith.constant 0 : i32
    %c0_i32_0 = arith.constant 0 : i32
    return %arg0, %arg1, %c0_i32 : i32, i32, i32
  }
  func.func @transform_2(%arg0: i32, %arg1: i32) -> (i32, i32, i32) {
    %c0_i32 = arith.constant 0 : i32
    %c0_i32_0 = arith.constant 0 : i32
    return %arg0, %arg1, %c0_i32 : i32, i32, i32
  }
  func.func @transform_3(%arg0: i32, %arg1: i32) -> (i32, i32) {
    %c0_i32 = arith.constant 0 : i32
    %c0_i32_0 = arith.constant 0 : i32
    %c0_i32_1 = arith.constant 0 : i32
    return %c0_i32, %c0_i32_0 : i32, i32
  }
  func.func @transform_4(%arg0: i32, %arg1: i32) -> (i32, i32) {
    %c0_i32 = arith.constant 0 : i32
    %c0_i32_0 = arith.constant 0 : i32
    %c0_i32_1 = arith.constant 0 : i32
    return %c0_i32, %c0_i32_0 : i32, i32
  }
  func.func @transform_5(%arg0: i32, %arg1: i32) -> (i32, i32) {
    %c0_i32 = arith.constant 0 : i32
    %c0_i32_0 = arith.constant 0 : i32
    %c0_i32_1 = arith.constant 0 : i32
    return %c0_i32, %c0_i32_0 : i32, i32
  }
  func.func @transform_6(%arg0: i32, %arg1: i32) -> (i32, i32) {
    %c0_i32 = arith.constant 0 : i32
    %c0_i32_0 = arith.constant 0 : i32
    %c0_i32_1 = arith.constant 0 : i32
    return %c0_i32, %c0_i32_0 : i32, i32
  }
  func.func @transform_7(%arg0: i32, %arg1: i32) -> (i32, i32) {
    %c0_i32 = arith.constant 0 : i32
    %c0_i32_0 = arith.constant 0 : i32
    %c0_i32_1 = arith.constant 0 : i32
    return %c0_i32, %c0_i32_0 : i32, i32
  }
  func.func @transform_8(%arg0: i32, %arg1: i32) -> (i32, i32) {
    %c0_i32 = arith.constant 0 : i32
    %c0_i32_0 = arith.constant 0 : i32
    %c0_i32_1 = arith.constant 0 : i32
    return %c0_i32, %c0_i32_0 : i32, i32
  }
  func.func @transform_9(%arg0: i32, %arg1: i32) -> (i32, i32, i32) {
    %c0_i32 = arith.constant 0 : i32
    %c0_i32_0 = arith.constant 0 : i32
    return %arg0, %arg1, %c0_i32 : i32, i32, i32
  }
  func.func @transform_10(%arg0: i32, %arg1: i32) -> (i32, i32, i32) {
    %c0_i32 = arith.constant 0 : i32
    %c0_i32_0 = arith.constant 0 : i32
    return %arg0, %arg1, %c0_i32 : i32, i32, i32
  }
  func.func @transform_11(%arg0: i32, %arg1: i32) -> (i32, i32, i32) {
    %c0_i32 = arith.constant 0 : i32
    %c0_i32_0 = arith.constant 0 : i32
    return %arg0, %arg1, %c0_i32 : i32, i32, i32
  }
}

</mosaic_0001>

<bundles_post_ra>
// kernel: tpu_custom_call.1
= control target key start
LH: loop header
LB: loop body
LE: loop exit
PB: predicated region body
PF: predicated region fallthrough
CT: control target
= control target key end

     0   :  { %s2024_s0 = inlined_call_operand.hbm [shape: f32[2,8,32], index: 0, kind: input, shape index: {}]   ;;  %s2025_s1 = inlined_call_operand.hbm [shape: f32[2,8,32], index: 1, kind: input, shape index: {}]   ;;  %s2026_s2 = inlined_call_operand.hbm [shape: f32[2,8,32], index: 2, kind: input, shape index: {}]   ;;  %s2027_s3 = inlined_call_operand.hbm [shape: f32[32,32], index: 3, kind: input, shape index: {}]   ;;  %s2028_s4 = inlined_call_operand.vmem [shape: f32[1,32], index: 4, kind: input, shape index: {}]   ;;  %s2029_s5 = inlined_call_operand.hbm [shape: f32[32,32], index: 5, kind: input, shape index: {}]   ;;  %s2030_s6 = inlined_call_operand.vmem [shape: f32[1,32], index: 6, kind: input, shape index: {}]   ;;  %s2031_s7 = inlined_call_operand.hbm [shape: f32[32,32], index: 7, kind: input, shape index: {}]   ;;  %s2032_s8 = inlined_call_operand.vmem [shape: f32[1,32], index: 8, kind: input, shape index: {}]   ;;  %s2033_s9 = inlined_call_operand.hbm [shape: f32[2,8,32], index: 9, kind: output, shape index: {0}]   ;;  %s2034_s10 = inlined_call_operand.hbm [shape: f32[2,8,32], index: 10, kind: output, shape index: {1}]   ;;  %s2035_s11 = inlined_call_operand.hbm [shape: f32[2,8,32], index: 11, kind: output, shape index: {2}]  }
   0x1   :  { %2056 = sst [smem:[#allocation29_spill]] %s2025_s1 }
   0x2   :  { %2057 = sst [smem:[#allocation30_spill]] %s2027_s3 }
   0x3   :  { %2058 = sst [smem:[#allocation31_spill]] %s2029_s5 }
   0x4   :  { %2059 = sst [smem:[#allocation32_spill]] %s2032_s8 }
   0x5   :  { %2060 = sst [smem:[#allocation33_spill]] %s2034_s10 }
   0x6   :  { %2061 = sst [smem:[#allocation34_spill]] %s2035_s11 }
   0x7   :  { %17 = vsyncpa [#allocation3], 0 }
   0x8   :  { %19 = vsyncpa [#allocation3 + $0x1], 0 }
   0x9   :  { %20 = vsyncpa [#allocation6], 0 }
   0xa   :  { %22 = vsyncpa [#allocation6 + $0x1], 0 }
   0xb   :  { %23 = vsyncpa [#allocation9], 0 }
   0xc   :  { %24 = vsyncpa [#allocation12], 0 }
   0xd   :  { %25 = vsyncpa [#allocation4], 0 }
   0xe   :  { %27 = vsyncpa [#allocation4 + $0x1], 0 }
   0xf   :  { %28 = vsyncpa [#allocation15], 0 }
  0x10   :  { %30 = vsyncpa [#allocation15 + $0x1], 0  ;;  %s1678_s17 = smov 0   ;;  %s1680_s18 = smov 0  }
  0x11   :  { %s1682_s19 = smov 0   ;;  %s1684_s20 = smov 0  }
  0x12   :  { %s1686_s21 = smov 0   ;;  %s1688_s22 = smov 0  }
  0x13 LB: > { %2062 = sst [smem:[#allocation23_spill]] %s1583_s17  ;;  %s1709_s23 = sadd.s32 4294967295, %s1603_s22   ;;  %s1603_s22 = sphi %s1688_s22, %s36_s22   ;;  %s1599_s21 = sphi %s1686_s21, %s2104_s21   ;;  %s1595_s20 = sphi %s1684_s20, %s2103_s20   ;;  %s1591_s19 = sphi %s1682_s19, %s2107_s19   ;;  %s1587_s18 = sphi %s1680_s18, %s2106_s18   ;;  %s1583_s17 = sphi %s1678_s17, %s2105_s17  }
  0x14   : > { %2063 = sst [smem:[#allocation24_spill]] %s1599_s21  ;;  %s2036_s24 = sadd.s32 4294967294, %s1603_s22  }
  0x15   : > { %2064 = sst [smem:[#allocation25_spill]] %s1603_s22  ;;  %p70_p0 = scmp.ne.s32.totalorder %s1587_s18, %s1583_s17 }
  0x16   : > { %p2050_p1 = scmp.eq.s32.totalorder %s1709_s23, 0  ;;  %p284_p3 = scmp.eq.s32.totalorder %s2036_s24, 1 }
  0x17   : > { %p1093_p5 = scmp.ge.s32.totalorder %s1603_s22, 1  ;;  %p347_p7 = scmp.lt.s32.totalorder %s1603_s22, 3 }
  0x18   : > { %p1720_p4 = por %p2050_p1, %p70_p0  ;;  %p1725_p6 = por %p284_p3, %p70_p0 }
  0x19   : > { %p1730_p8 = pnand %p1093_p5, %p347_p7  ;;  %s1605_s28 = smov [#allocation8]  }
  0x1a   : > { %s2065_s25 = scalar_select %p1720_p4, 1, 0 }
  0x1b   : > { %s2066_s26 = scalar_select %p1725_p6, 1, 0 }
  0x1c   : > { %s2068_s27 = scalar_select %p1730_p8, 1, 0 }
  0x1d   : > { %2067 = sst [smem:[#allocation26_spill]] %s2066_s26  ;;  %s359_s29 = sshll.u32 %s1605_s28, 4  ;;  %s360_s29 = int_to_ptr.vmem [resolvable:$true] %s359_s29 }
  0x1e   : > { %p1200_p9 = pneg %p1730_p8  ;;  %s48_s12 = sadd.s32 1, %s1599_s21 }
  0x1f   : > { %s1304_s13 = scalar_lea.vmem %s360_s29, 512  ;;  %p1312_p5 = scmp.lt.s32.totalorder %s360_s29, %s360_s29 }
  0x20   : > { %p1739_p11 = pnand %p1200_p9, %p2050_p1  ;;  %p1305_p13 = scmp.ne.s32.totalorder %s360_s29, %s1304_s13 }
  0x21   : > { %p1313_p7 = scmp.lt.s32.totalorder %s1304_s13, %s1304_s13 }
  0x22   : > { %p2051_p12 = pneg %p1739_p11 }
  0x23   : > { %p1314_p2 = por %p1313_p7, %p1312_p5 }
  0x24   : > { %p1307_p0 = pnand %p1305_p13, %p2051_p12 }
  0x26   : > { %p1308_p3 = pneg %p1307_p0 }
  0x28   : > { %p1315_p10 = pnand %p1314_p2, %p1308_p3 }
  0x2a   : > { %1318 = shalt.err (!%p1315_p10)
}
  0x2b   : > { %s2039_s14 = smov 128   ;;  %s2041_s15 = smov 8  }
  0x2c   : > { %s2070_s3 = sld [smem:[#allocation30_spill]]  ;;  %p50_p2 = scmp.ge.s32.totalorder %s48_s12, 2 }
  0x2d   : > { %s57_s13 = sadd.s32 1, %s1591_s19  ;;  %p64_p9 = scmp.ne.s32.totalorder %s1591_s19, %s1587_s18 }
  0x2e   : > { %p65_p10 = scmp.eq.s32.totalorder %s1603_s22, 0  ;;  %s2109_s12 = smov (%p50_p2, %s48_s12), 0 }
  0x2f   : > { %2071 = sst [smem:[#allocation27_spill]] %s2109_s12  ;;  %p2072_p0 = scmp.eq.s32.totalorder %s1709_s23, 1 }
  0x30   : > { %p66_p13 = por %p65_p10, %p64_p9  ;;  %s52_s26 = ssub.s32 %s1599_s21, %s2109_s12 }
  0x31   : > { %p1765_p3 = por %p2072_p0, %p64_p9  ;;  %p1233_p5 = scmp.lt.s32.totalorder %s1603_s22, 2 }
  0x32   : > { %1203 = dma.hbm_to_vmem [thread:$0]  (!%p1739_p11), %s2070_s3, 512, %s360_s29, [#allocation9], %s2039_s14, %s2039_s14, %s2041_s15  }
  0x33   : > { %s2073_s24 = scalar_select %p1765_p3, 1, 0 }
  0x34   : > { %p55_p7 = scmp.eq.s32.totalorder %s52_s26, 0  ;;  %s2045_s17 = sand.u32 1, %s1591_s19  }
  0x35   : > { %s1775_s29 = sshll.u32 %s2045_s17, 3  ;;  %s1778_s16 = sshll.u32 %s1599_s21, 7 }
  0x36   : > { %s1781_s28 = scalar_select %p55_p7, %s1591_s19, %s57_s13  }
  0x37   : > { %p1783_p2 = pnand %p1233_p5, %p66_p13  ;;  %s427_s15 = sand.u32 1, %s1603_s22  }
  0x38   : > { %2074 = sst [smem:[#allocation28_spill]] %s1781_s28  ;;  %s431_s11 = scalar_lea.vmem [#allocation5], %s1775_s29 }
  0x39   : > { %s2076_s1 = sld [smem:[#allocation29_spill]]  ;;  %s439_s17 = sshll.u32 %s431_s11, 4  ;;  %s440_s17 = int_to_ptr.vmem [resolvable:$true] %s439_s17 }
  0x3a   : > { %s1608_s8 = smov [#allocation10]   ;;  %s1793_s10 = scalar_lea.sflag [#allocation6], %s427_s15 }
  0x3b   : > { %s375_s21 = sshll.u32 %s1608_s8, 4  ;;  %p2052_p9 = pneg %p1783_p2  ;;  %s376_s21 = int_to_ptr.vmem [resolvable:$true] %s375_s21 }
  0x3c   : > { %s1332_s13 = scalar_lea.vmem %s440_s17, 128  ;;  %s1609_s28 = smov [#allocation5]  }
  0x3d   : > { %p1333_p10 = scmp.ne.s32.totalorder %s440_s17, %s1332_s13  ;;  %s1337_s22 = sshll.u32 %s1609_s28, 4  ;;  %s1338_s22 = int_to_ptr.vmem [resolvable:$false] %s1337_s22 }
  0x3e   : > { %s1339_s3 = scalar_lea.vmem %s1338_s22, 256  ;;  %p1340_p5 = scmp.lt.s32.totalorder %s440_s17, %s1338_s22 }
  0x3f   : > { %s437_s26 = scalar_lea.hbm %s2076_s1, %s1778_s16  ;;  %p1335_p13 = pnand %p1333_p10, %p2052_p9 }
  0x40   : > { %p1341_p7 = scmp.lt.s32.totalorder %s1339_s3, %s1332_s13 }
  0x41   : > { %p1336_p0 = pneg %p1335_p13 }
  0x42   : > { %p1342_p1 = por %p1341_p7, %p1340_p5 }
  0x44   : > { %p1343_p12 = pnand %p1342_p1, %p1336_p0 }
  0x46   : > { %1346 = shalt.err (!%p1343_p12)
}
  0x47   : > { %1216 = dma.hbm_to_vmem [thread:$0]  (!%p1783_p2), %s437_s26, 128, %s440_s17, %s1793_s10  }
  0x48   : > { %s1358_s8 = scalar_lea.vmem %s376_s21, 512  ;;  %p2077_p10 = pneg %p1739_p11 }
  0x49   : > { %p1359_p6 = scmp.ne.s32.totalorder %s376_s21, %s1358_s8  ;;  %p1366_p3 = scmp.lt.s32.totalorder %s376_s21, %s376_s21 }
  0x4a   : > { %p1367_p4 = scmp.lt.s32.totalorder %s1358_s8, %s1358_s8 }
  0x4b   : > { %p1361_p13 = pnand %p1359_p6, %p2077_p10 }
  0x4c   : > { %p1368_p8 = por %p1367_p4, %p1366_p3 }
  0x4d   : > { %p1362_p9 = pneg %p1361_p13 }
  0x4f   : > { %p1369_p5 = pnand %p1368_p8, %p1362_p9 }
  0x51   : > { %1372 = shalt.err (!%p1369_p5)
}
  0x52   : > { %s2078_s11 = smov 8   ;;  %s2079_s22 = smov 128  }
  0x53   : > { %s2080_s5 = sld [smem:[#allocation31_spill]]  ;;  %s1610_s17 = smov [#allocation11]  }
  0x54   : > { %s391_s28 = sshll.u32 %s1610_s17, 4  ;;  %p2081_p6 = pmov %p2077_p10  ;;  %s392_s28 = int_to_ptr.vmem [resolvable:$true] %s391_s28 }
  0x55   : > { %s1384_s26 = scalar_lea.vmem %s392_s28, 512  ;;  %p1392_p12 = scmp.lt.s32.totalorder %s392_s28, %s392_s28 }
  0x56   : > { %p1385_p1 = scmp.ne.s32.totalorder %s392_s28, %s1384_s26  ;;  %p1393_p3 = scmp.lt.s32.totalorder %s1384_s26, %s1384_s26 }
  0x58   : > { %p1387_p4 = pnand %p1385_p1, %p2081_p6  ;;  %p1394_p9 = por %p1393_p3, %p1392_p12 }
  0x59   : > { %1206 = dma.hbm_to_vmem [thread:$0]  (!%p1739_p11), %s2080_s5, 512, %s376_s21, [#allocation9], %s2079_s22, %s2079_s22, %s2078_s11  }
  0x5a   : > { %p1388_p8 = pneg %p1387_p4 }
  0x5c   : > { %p1395_p0 = pnand %p1394_p9, %p1388_p8 }
  0x5e   : > { %1398 = shalt.err (!%p1395_p0)
}
  0x5f   : > { %1209 = dma.hbm_to_vmem [thread:$0]  (!%p1739_p11), %s2031_s7, 512, %s392_s28, [#allocation12], %s2079_s22, %s2079_s22, %s2078_s11  }
  0x60   : > { %s418_s12 = scalar_lea.hbm %s2024_s0, %s1778_s16  ;;  %s412_s15 = scalar_lea.vmem [#allocation2], %s1775_s29 }
  0x61   : > { %s420_s17 = sshll.u32 %s412_s15, 4  ;;  %s2082_s26 = sand.u32 1, %s1591_s19   ;;  %s421_s17 = int_to_ptr.vmem [resolvable:$true] %s420_s17 }
  0x62   : > { %s409_s30 = scalar_lea.sflag [#allocation3], %s2082_s26  ;;  %s1412_s1 = scalar_lea.vmem %s421_s17, 128 }
  0x63   : > { %p1413_p7 = scmp.ne.s32.totalorder %s421_s17, %s1412_s1  ;;  %p2083_p10 = pneg %p1783_p2 }
  0x64   : > { %s1611_s21 = smov [#allocation2]  }
  0x65   : > { %p1415_p13 = pnand %p1413_p7, %p2083_p10  ;;  %s1417_s13 = sshll.u32 %s1611_s21, 4  ;;  %s1418_s13 = int_to_ptr.vmem [resolvable:$false] %s1417_s13 }
  0x66   : > { %s1419_s5 = scalar_lea.vmem %s1418_s13, 256  ;;  %p1420_p11 = scmp.lt.s32.totalorder %s421_s17, %s1418_s13 }
  0x67   : > { %p1416_p5 = pneg %p1415_p13  ;;  %p1421_p1 = scmp.lt.s32.totalorder %s1419_s5, %s1412_s1 }
  0x69   : > { %p1422_p6 = por %p1421_p1, %p1420_p11 }
  0x6b   : > { %p1423_p4 = pnand %p1422_p6, %p1416_p5 }
  0x6d   : > { %1426 = shalt.err (!%p1423_p4)
}
  0x6e   : > { %1213 = dma.hbm_to_vmem [thread:$0]  (!%p1783_p2), %s418_s12, 128, %s421_s17, %s409_s30  }
  0x6f   : > { %s456_s28 = scalar_lea.hbm %s2026_s2, %s1778_s16  ;;  %s450_s3 = scalar_lea.vmem [#allocation7], %s1775_s29 }
  0x70   : > { %s458_s8 = sshll.u32 %s450_s3, 4  ;;  %p2084_p12 = pmov %p2083_p10  ;;  %s459_s8 = int_to_ptr.vmem [resolvable:$true] %s458_s8 }
  0x71   : > { %s1440_s15 = scalar_lea.vmem %s459_s8, 128  ;;  %s1612_s1 = smov [#allocation7]  }
  0x72   : > { %p1441_p8 = scmp.ne.s32.totalorder %s459_s8, %s1440_s15  ;;  %s1445_s5 = sshll.u32 %s1612_s1, 4  ;;  %s1446_s5 = int_to_ptr.vmem [resolvable:$false] %s1445_s5 }
  0x73   : > { %s1447_s26 = scalar_lea.vmem %s1446_s5, 256  ;;  %p1448_p0 = scmp.lt.s32.totalorder %s459_s8, %s1446_s5 }
  0x74   : > { %p1443_p3 = pnand %p1441_p8, %p2084_p12  ;;  %p1449_p7 = scmp.lt.s32.totalorder %s1447_s26, %s1440_s15 }
  0x76   : > { %p1444_p9 = pneg %p1443_p3  ;;  %p1450_p10 = por %p1449_p7, %p1448_p0 }
  0x78   : > { %p1451_p13 = pnand %p1450_p10, %p1444_p9 }
  0x7a   : > { %1454 = shalt.err (!%p1451_p13)
}
  0x7b   : > { %1219 = dma.hbm_to_vmem [thread:$0]  (!%p1783_p2), %s456_s28, 128, %s459_s8, %s1793_s10  }
  0x7c   : > { %p2085_p5 = scmp.ne.s32.totalorder %s2068_s27, 0 }
  0x7d   : > { %s1851_s29 = sand.u32 (!%p2085_p5), 1, %s1587_s18   ;;  %p2086_p11 = scmp.ne.s32.totalorder (!%p2085_p5), %s2065_s25, 0 }
  0x7e   : > { %467 = sbr.rel (%p2085_p5) target bundleno = 405 (0x195), region = 56  ;;  %s1854_s16 = sshll.u32 (!%p2085_p5), %s1851_s29, 3 }
  0x7f   : > { %s470_s12 = scalar_lea.sflag (!%p2085_p5), [#allocation3], %s1851_s29  ;;  %s473_s17 = scalar_lea.vmem (!%p2085_p5), [#allocation2], %s1854_s16 }
  0x83   : > { %1558 = dma.done.wait (%p2086_p11), %s470_s12, 128  }
  0x84   : > { %1560 = vsyncadd (%p2086_p11), %s470_s12, 4294967168  ;;  %s478_s10 = sand.u32 1, %s1709_s23   ;;  %s482_s14 = scalar_lea.vmem [#allocation5], %s1854_s16 }
  0x85   : > { %s479_s27 = scalar_lea.sflag [#allocation6], %s478_s10 }
  0x86   : > { %1562 = dma.done.wait (%p2086_p11), %s479_s27, 256  }
  0x87   : > { %1564 = vsyncadd (%p2086_p11), %s479_s27, 4294967040  ;;  %s491_s30 = scalar_lea.vmem [#allocation7], %s1854_s16  ;;  %p2087_p2 = scmp.eq.s32.totalorder %s1709_s23, 0 }
  0x89   : > { %1566 = dma.done.wait (%p2087_p2), [#allocation9], 1024   ;;  %p2088_p1 = pmov %p2087_p2 }
  0x8b   : > { %1568 = vsyncadd (%p2088_p1), [#allocation9], 4294966272  ;;  %p2089_p6 = pmov %p2088_p1 }
  0x8c   : > { %p2090_p4 = pmov %p2088_p1 }
  0x8d   : > { %1570 = dma.done.wait (%p2089_p6), [#allocation12], 512  }
  0x8e   : > { %1572 = vsyncadd (%p2090_p4), [#allocation12], 4294966784  ;;  %v1613_v0 = vmov 0.0   ;;  %vm1614_vm0 = vmmov 0   ;;  %v568_v1 = vld [vmem:[#allocation8 + $0x18] sm:$0xff]  ;;  %v567_v2 = vld [vmem:[#allocation8 + $0x10] sm:$0xff] }
  0x8f   : > { %1143 = vmatprep.subr.mxu0 %v1613_v0  ;;  %1154 = vmatprep.subr.mxu1 %v1613_v0  ;;  %v654_v3 = vld [vmem:[#allocation10 + $0x18] sm:$0xff]  ;;  %v566_v4 = vld [vmem:[#allocation8 + $0x8] sm:$0xff]  ;;  %v653_v5 = vld [vmem:[#allocation10 + $0x10] sm:$0xff]  ;;  %vm576_vm1 = vcmask 261120   ;;  %s1895_s13 = sshll.u32 %s1595_s20, 7  ;;  %s547_s11 = scalar_lea.vmem [#allocation13], %s1854_s16 }
  0x90   : > { %1151 = vmatprep.mubr.msk.f32.mxu0 %vm1614_vm0, %v1613_v0  ;;  %1162 = vmatprep.mubr.msk.f32.mxu1 %vm1614_vm0, %v1613_v0  ;;  %v652_v6 = vld [vmem:[#allocation10 + $0x8] sm:$0xff]  ;;  %v565_v7 = vld [vmem:[#allocation8] sm:$0xff]  ;;  %v562_v8 = vld [vmem:[%s473_s17] sm:$0xff]  ;;  %s846_s22 = sshll.u32 %s547_s11, 4  ;;  %s554_s8 = scalar_lea.vmem [#allocation14], %s1854_s16  ;;  %s1910_s22 = int_to_ptr.vmem [resolvable:$true] %s846_s22 }
  0x91   : > { %1144 = vmatpush3.msra.mxu0 %v568_v1  ;;  %1155 = vmatpush3.msra.mxu1 %v654_v3  ;;  %v739_v9 = vld [vmem:[#allocation11 + $0x18] sm:$0xff]  ;;  %v651_v10 = vld [vmem:[#allocation10] sm:$0xff]  ;;  %v738_v12 = vld [vmem:[#allocation11 + $0x10] sm:$0xff]  ;;  %s860_s15 = sshll.u32 %s554_s8, 4  ;;  %s1908_s20 = scalar_lea.hbm %s2033_s9, %s1895_s13  ;;  %s1918_s15 = int_to_ptr.vmem [resolvable:$true] %s860_s15 }
  0x92   : > { %1145 = vmatprep.subr.mxu0 %v1613_v0  ;;  %1156 = vmatprep.subr.mxu1 %v1613_v0  ;;  %v563_v11 = vld [vmem:[%s482_s14] sm:$0xff]  ;;  %v564_v15 = vld [vmem:[%s491_s30] sm:$0xff]  ;;  %s2091_s17 = sld [smem:[#allocation33_spill]]  ;;  %s822_s30 = scalar_lea.sflag [#allocation4], %s1851_s29 }
  0x93   : > { %1146 = vmatpush3.msra.mxu0 %v567_v2  ;;  %1157 = vmatpush3.msra.mxu1 %v653_v5  ;;  %v737_v13 = vld [vmem:[#allocation11 + $0x8] sm:$0xff]  ;;  %v736_v14 = vld [vmem:[#allocation11] sm:$0xff]  ;;  %v1114_v16 = vld [vmem:[%s2028_s4] ss:$0 sm:$0xff]  ;;  %s1455_s25 = scalar_lea.vmem %s1910_s22, 128  ;;  %p2093_p12 = scmp.ne.s32.totalorder %s2073_s24, 0 }
  0x94   : > { %1147 = vmatprep.subr.mxu0 %v1613_v0  ;;  %1158 = vmatprep.subr.mxu1 %v1613_v0  ;;  %v1116_v18 = vld [vmem:[%s2030_s6] ss:$0 sm:$0xff]  ;;  %p1456_p8 = scmp.ne.s32.totalorder %s1910_s22, %s1455_s25  ;;  %s1615_s21 = smov [#allocation13]  }
  0x95   : > { %1148 = vmatpush3.msra.mxu0 %v566_v4  ;;  %1159 = vmatpush3.msra.mxu1 %v652_v6  ;;  %s1459_s28 = sshll.u32 %s1615_s21, 4  ;;  %s1460_s28 = int_to_ptr.vmem [resolvable:$false] %s1459_s28 }
  0x96   : > { %1149 = vmatprep.subr.mxu0 %v1613_v0  ;;  %1160 = vmatprep.subr.mxu1 %v1613_v0  ;;  %p1457_p3 = pnand %p1456_p8, %p2093_p12  ;;  %s1461_s3 = scalar_lea.vmem %s1460_s28, 256 }
  0x97   : > { %1150 = vmatpush3.msra.mxu0 %v565_v7  ;;  %1161 = vmatpush3.msra.mxu1 %v651_v10  ;;  %p1462_p0 = scmp.lt.s32.totalorder %s1910_s22, %s1460_s28  ;;  %p1463_p7 = scmp.lt.s32.totalorder %s1461_s3, %s1455_s25 }
  0x98   : > { %1152 = vmatmul.mubr.msk.f32.vlgmr.msra.gmra.mxu0 %vm576_vm1, %v562_v8  ;;  %1165 = vmatprep.subr.mxu0 %v1613_v0  ;;  %s2092_s27 = smov %s2091_s17  ;;  %s1916_s14 = scalar_lea.hbm %s2091_s17, %s1895_s13 }
  0x99   : > { %1166 = vmatpush3.msra.mxu0 %v739_v9  ;;  %1163 = vmatmul.mubr.msk.f32.vlgmr.msra.gmra.mxu1 %vm576_vm1, %v563_v11  ;;  %p1458_p9 = pneg %p1457_p3  ;;  %p1464_p10 = por %p1463_p7, %p1462_p0 }
  0x9a   : > { %1167 = vmatprep.subr.mxu0 %v1613_v0  ;;  %1173 = vmatprep.mubr.msk.f32.mxu0 %vm1614_vm0, %v1613_v0 }
  0x9b   : > { %1168 = vmatpush3.msra.mxu0 %v738_v12  ;;  %p1465_p13 = pnand %p1464_p10, %p1458_p9 }
  0x9c   : > { %1169 = vmatprep.subr.mxu0 %v1613_v0 }
  0x9d   : > { %1170 = vmatpush3.msra.mxu0 %v737_v13 }
  0x9e   : > { %1171 = vmatprep.subr.mxu0 %v1613_v0 }
  0x9f   : > { %1172 = vmatpush3.msra.mxu0 %v736_v14 }
  0xa0   : > { %1174 = vmatmul.mubr.msk.f32.vlgmr.msra.gmra.mxu0 %vm576_vm1, %v564_v15 }
 0x158   : > { %v646_v17 = vpop.f32.mrf.mxu0 }
 0x159   : > { %v647_v19 = vadd.f32 %v1114_v16, %v646_v17  ;;  %v731_v21 = vpop.f32.mrf.mxu1 }
 0x15a   : > { %v1153_v20 = vpop.f32.mrf.mxu0  ;;  %v732_v22 = vadd.f32 %v1116_v18, %v731_v21 }
 0x15b   : > { %650 = vst.msk [vmem:[%s547_s11] sm:$0xff] %vm576_vm1, %v647_v19  ;;  %v1164_v23 = vpop.f32.mrf.mxu1 }
 0x15c   : > { %1468 = shalt.err (!%p1465_p13)
}
 0x15d   : > { %s1469_s11 = scalar_lea.hbm %s1908_s20, 128  ;;  %s1473_s5 = scalar_lea.hbm %s2033_s9, 256 }
 0x15e   : > { %p1470_p5 = scmp.ne.s32.totalorder %s1908_s20, %s1469_s11  ;;  %p1474_p1 = scmp.lt.s32.totalorder %s1908_s20, %s2033_s9 }
 0x15f   : > { %p1475_p6 = scmp.lt.s32.totalorder %s1473_s5, %s1469_s11 }
 0x160   : > { %p1471_p11 = pnand %p1470_p5, %p2093_p12 }
 0x161   : > { %p1476_p4 = por %p1475_p6, %p1474_p1 }
 0x162   : > { %p1472_p2 = pneg %p1471_p11 }
 0x164   : > { %p1477_p8 = pnand %p1476_p4, %p1472_p2 }
 0x166   : > { %1480 = shalt.err (!%p1477_p8)
}
 0x167   : > { %1194 = dma.vmem_to_hbm [thread:$0]  (%p2093_p12), %s1910_s22, 128, %s1908_s20, %s822_s30   ;;  %735 = vst.msk [vmem:[%s554_s8] sm:$0xff] %vm576_vm1, %v732_v22 }
 0x168   : > { %s561_s17 = scalar_lea.vmem [#allocation16], %s1854_s16  ;;  %s2094_s3 = sld [smem:[#allocation32_spill]] }
 0x169   : > { %s1948_s25 = sshll.u32 %s561_s17, 4  ;;  %s1955_s11 = scalar_lea.sflag [#allocation15], %s478_s10  ;;  %s875_s25 = int_to_ptr.vmem [resolvable:$true] %s1948_s25 }
 0x16a   : > { %s1481_s29 = scalar_lea.vmem %s1918_s15, 128  ;;  %s1616_s22 = smov [#allocation14]  }
 0x16b   : > { %p1482_p3 = scmp.ne.s32.totalorder %s1918_s15, %s1481_s29  ;;  %s1485_s20 = sshll.u32 %s1616_s22, 4  ;;  %s1486_s20 = int_to_ptr.vmem [resolvable:$false] %s1485_s20 }
 0x16c   : > { %s1487_s8 = scalar_lea.vmem %s1486_s20, 256  ;;  %p1488_p7 = scmp.lt.s32.totalorder %s1918_s15, %s1486_s20 }
 0x16d   : > { %p1483_p9 = pnand %p1482_p3, %p2093_p12  ;;  %p1489_p10 = scmp.lt.s32.totalorder %s1487_s8, %s1481_s29 }
 0x16e   : > { %v1118_v24 = vld [vmem:[%s2094_s3] ss:$0 sm:$0xff] }
 0x16f   : > { %p1484_p0 = pneg %p1483_p9  ;;  %p1490_p13 = por %p1489_p10, %p1488_p7 }
 0x171   : > { %p1491_p5 = pnand %p1490_p13, %p1484_p0 }
 0x173   : > { %1494 = shalt.err (!%p1491_p5)
}
 0x174   : > { %s1495_s23 = scalar_lea.hbm %s1916_s14, 128  ;;  %s1499_s1 = scalar_lea.hbm %s2092_s27, 256 }
 0x175   : > { %p1496_p11 = scmp.ne.s32.totalorder %s1916_s14, %s1495_s23  ;;  %p1500_p6 = scmp.lt.s32.totalorder %s1916_s14, %s2092_s27 }
 0x176   : > { %p1501_p4 = scmp.lt.s32.totalorder %s1499_s1, %s1495_s23 }
 0x177   : > { %p1497_p2 = pnand %p1496_p11, %p2093_p12 }
 0x178   : > { %p1502_p8 = por %p1501_p4, %p1500_p6 }
 0x179   : > { %p1498_p1 = pneg %p1497_p2 }
 0x17b   : > { %p1503_p3 = pnand %p1502_p8, %p1498_p1 }
 0x17d   : > { %1506 = shalt.err (!%p1503_p3)
}
 0x17e   : > { %1195 = dma.vmem_to_hbm [thread:$0]  (%p2093_p12), %s1918_s15, 128, %s1916_s14, %s1955_s11   ;;  %v816_v25 = vpop.f32.mrf.mxu0 }
 0x17f   : > { %v817_v26 = vadd.f32 %v1118_v24, %v816_v25  ;;  %s2095_s28 = sld [smem:[#allocation34_spill]]  ;;  %s1507_s29 = scalar_lea.vmem %s875_s25, 128 }
 0x180   : > { %v1175_v27 = vpop.f32.mrf.mxu0  ;;  %p1508_p9 = scmp.ne.s32.totalorder %s875_s25, %s1507_s29  ;;  %s1617_s22 = smov [#allocation16]  }
 0x181   : > { %820 = vst.msk [vmem:[%s561_s17] sm:$0xff] %vm576_vm1, %v817_v26  ;;  %s1511_s20 = sshll.u32 %s1617_s22, 4  ;;  %s1512_s20 = int_to_ptr.vmem [resolvable:$false] %s1511_s20 }
 0x182   : > { %p1509_p0 = pnand %p1508_p9, %p2093_p12  ;;  %s1513_s15 = scalar_lea.vmem %s1512_s20, 256 }
 0x183   : > { %p1514_p10 = scmp.lt.s32.totalorder %s875_s25, %s1512_s20  ;;  %p1515_p13 = scmp.lt.s32.totalorder %s1513_s15, %s1507_s29 }
 0x184   : > { %p1510_p7 = pneg %p1509_p0 }
 0x185   : > { %s872_s3 = scalar_lea.hbm %s2095_s28, %s1895_s13  ;;  %p1516_p5 = por %p1515_p13, %p1514_p10 }
 0x187   : > { %p1517_p11 = pnand %p1516_p5, %p1510_p7 }
 0x189   : > { %1520 = shalt.err (!%p1517_p11)
}
 0x18a   : > { %s1521_s13 = scalar_lea.hbm %s872_s3, 128  ;;  %s1525_s17 = scalar_lea.hbm %s2095_s28, 256 }
 0x18b   : > { %p1522_p2 = scmp.ne.s32.totalorder %s872_s3, %s1521_s13  ;;  %p1526_p4 = scmp.lt.s32.totalorder %s872_s3, %s2095_s28 }
 0x18c   : > { %p1527_p8 = scmp.lt.s32.totalorder %s1525_s17, %s1521_s13 }
 0x18d   : > { %p1523_p1 = pnand %p1522_p2, %p2093_p12 }
 0x18e   : > { %p1528_p3 = por %p1527_p8, %p1526_p4 }
 0x18f   : > { %p1524_p6 = pneg %p1523_p1 }
 0x191   : > { %p1529_p9 = pnand %p1528_p3, %p1524_p6 }
 0x193   : > { %1532 = shalt.err (!%p1529_p9)
}
 0x194   : > { %1196 = dma.vmem_to_hbm [thread:$0]  (%p2093_p12), %s875_s25, 128, %s872_s3, %s1955_s11  }
 0x195 PF: > { %s2096_s10 = sld [smem:[#allocation23_spill]] }
 0x196   : > { %s2097_s30 = sld [smem:[#allocation26_spill]] }
 0x197   : > { %s2098_s1 = sld [smem:[#allocation25_spill]] }
 0x19b   : > { %s886_s5 = sand.u32 1, %s2096_s10  }
 0x19c   : > { %p2099_p0 = scmp.ne.s32.totalorder %s2097_s30, 0  ;;  %s887_s26 = scalar_lea.sflag [#allocation4], %s886_s5 }
 0x19d   : > { %p2100_p7 = scmp.ge.s32.totalorder %s2098_s1, 2 }
 0x19f   : > { %p1221_p10 = pnand %p2100_p7, %p2099_p0 }
 0x1a1   : > { %p1222_p13 = pneg %p1221_p10 }
 0x1a3   : > { %1574 = dma.done.wait (%p1222_p13), %s887_s26, 128  }
 0x1a4   : > { %1576 = vsyncadd (%p1222_p13), %s887_s26, 4294967168  ;;  %s2101_s12 = sadd.s32 4294967294, %s2098_s1  }
 0x1a5   : > { %s895_s21 = sand.u32 1, %s2101_s12  }
 0x1a6   : > { %s896_s29 = scalar_lea.sflag [#allocation15], %s895_s21 }
 0x1a7   : > { %1578 = dma.done.wait (%p1222_p13), %s896_s29, 256  }
 0x1a8   : > { %1580 = vsyncadd (%p1222_p13), %s896_s29, 4294967040  ;;  %s36_s22 = sadd.s32 1, %s2098_s1   ;;  %s2102_s24 = sld [smem:[#allocation28_spill]] }
 0x1a9   : > { %p33_p12 = scmp.ge.s32.totalorder %s36_s22, 4   ;;  %s2103_s20 = sld [smem:[#allocation24_spill]] }
 0x1aa   : > { %s2104_s21 = sld [smem:[#allocation27_spill]]  ;;  %s2105_s17 = smov %s1587_s18 }
 0x1ab   : > { %s2106_s18 = smov %s1591_s19  ;;  %35 = sbr.rel (!%p33_p12) target bundleno = 19 (0x13), region = 169 }
 0x1ae   : > { %s2107_s19 = smov %s2102_s24 }
 0x1b0   :  { %910 = vsyncpa [#allocation3], 1 }
 0x1b1   :  { %912 = vsyncpa [#allocation3 + $0x1], 1 }
 0x1b2   :  { %913 = vsyncpa [#allocation6], 1 }
 0x1b3   :  { %915 = vsyncpa [#allocation6 + $0x1], 1 }
 0x1b4   :  { %916 = vsyncpa [#allocation9], 1 }
 0x1b5   :  { %917 = vsyncpa [#allocation12], 1 }
 0x1b6   :  { %918 = vsyncpa [#allocation4], 1 }
 0x1b7   :  { %920 = vsyncpa [#allocation4 + $0x1], 1 }
 0x1b8   :  { %921 = vsyncpa [#allocation15], 1 }
 0x1b9   :  { %923 = vsyncpa [#allocation15 + $0x1], 1 }

</bundles_post_ra>
